<compile_context>
chip_gen: v7x
topology: tpu7x:2x2x1
jax: 0.10.0
libtpu: 0.0.40
codegen_flags: <defaults>
</compile_context>

<pallas_src>
import jax
import jax.numpy as jnp
from jax.experimental import pallas as pl
from jax.experimental.pallas import tpu as pltpu


def _triplet_mlp_kernel(x1_ref, x2_ref, x3_ref, w1_ref, b1_ref, w2_ref, b2_ref, o_ref):
    # Fold the triplet axis into the batch: (3*B, D_in), one matmul pair total.
    x = jnp.concatenate([x1_ref[...], x2_ref[...], x3_ref[...]], axis=0)
    h = jnp.dot(x, w1_ref[...], preferred_element_type=jnp.float32)
    h = jnp.maximum(h + b1_ref[...], 0.0)                      # ReLU
    out = jnp.dot(h, w2_ref[...], preferred_element_type=jnp.float32)
    out = out + b2_ref[...]
    o_ref[...] = out.astype(o_ref.dtype)                       # lane-dense store


def triplet_forward(x1, x2, x3, w1, b1, w2, b2):
    """Apply the shared embedding MLP to (x1, x2, x3) -> (out1, out2, out3)."""
    B, D_in = x1.shape
    H = w1.shape[1]
    E = w2.shape[1]

    # Pad the output width to a multiple of 128 lanes so the kernel's output
    # store is unmasked (lane-dense).  Padding is on the (tiny) weights only.
    E_pad = max(128, ((E + 127) // 128) * 128)
    if E_pad != E:
        w2p = jnp.pad(w2, ((0, 0), (0, E_pad - E)))
        b2p = jnp.pad(b2, ((0, E_pad - E),))
    else:
        w2p, b2p = w2, b2

    b1_2d = b1.reshape(1, H)
    b2_2d = b2p.reshape(1, E_pad)

    vmem = pl.BlockSpec(memory_space=pltpu.MemorySpace.VMEM)

    out = pl.pallas_call(
        _triplet_mlp_kernel,
        out_shape=jax.ShapeDtypeStruct((3 * B, E_pad), x1.dtype),
        in_specs=[vmem] * 7,          # whole (tiny) arrays resident in VMEM
        out_specs=vmem,               # single invocation, no grid/pipelining
    )(x1, x2, x3, w1, b1_2d, w2p, b2_2d)

    out = out[:, :E]                  # drop lane padding
    return out[0:B], out[B:2 * B], out[2 * B:3 * B]


def _init_params(key, d_in, hidden, embed):
    k1, k2, k3, k4 = jax.random.split(key, 4)
    w1 = jax.random.normal(k1, (d_in, hidden), jnp.float32) * (1.0 / jnp.sqrt(d_in))
    b1 = jax.random.normal(k2, (hidden,), jnp.float32) * 0.01
    w2 = jax.random.normal(k3, (hidden, embed), jnp.float32) * (1.0 / jnp.sqrt(hidden))
    b2 = jax.random.normal(k4, (embed,), jnp.float32) * 0.01
    return w1, b1, w2, b2


if __name__ == "__main__":
    B, D_IN, HIDDEN, EMBED = 8, 32, 128, 32

    key = jax.random.PRNGKey(0)
    kx1, kx2, kx3, kp = jax.random.split(key, 4)
    x1 = jax.random.normal(kx1, (B, D_IN), jnp.float32)
    x2 = jax.random.normal(kx2, (B, D_IN), jnp.float32)
    x3 = jax.random.normal(kx3, (B, D_IN), jnp.float32)

    w1, b1, w2, b2 = _init_params(kp, D_IN, HIDDEN, EMBED)

    out1, out2, out3 = triplet_forward(x1, x2, x3, w1, b1, w2, b2)
    jax.block_until_ready((out1, out2, out3))

    # Reference check (plain JAX) for the shared embedding MLP.
    def ref(x):
        h = jnp.maximum(x @ w1 + b1, 0.0)
        return h @ w2 + b2

    assert out1.shape == (B, EMBED) and out2.shape == (B, EMBED) and out3.shape == (B, EMBED)
    assert jnp.allclose(out1, ref(x1), atol=1e-5)
    assert jnp.allclose(out2, ref(x2), atol=1e-5)
    assert jnp.allclose(out3, ref(x3), atol=1e-5)

    print("KERNEL_OK")
</pallas_src>

<mosaic_0001>
module attributes {stable_mosaic.version = 11 : i64} {
  func.func @_triplet_mlp_kernel(%arg0: memref<8x32xf32, #tpu.memory_space<vmem>>, %arg1: memref<8x32xf32, #tpu.memory_space<vmem>>, %arg2: memref<8x32xf32, #tpu.memory_space<vmem>>, %arg3: memref<32x128xf32, #tpu.memory_space<vmem>>, %arg4: memref<1x128xf32, #tpu.memory_space<vmem>>, %arg5: memref<128x128xf32, #tpu.memory_space<vmem>>, %arg6: memref<1x128xf32, #tpu.memory_space<vmem>>, %arg7: memref<24x128xf32, #tpu.memory_space<vmem>>) attributes {dimension_semantics = [], scalar_prefetch = 0 : i64, scratch_operands = 0 : i64, tpu.core_type = #tpu.core_type<tc>} {
    %c0 = arith.constant 0 : index
    %c0_0 = arith.constant 0 : index
    %0 = vector.load %arg0[%c0, %c0_0] : memref<8x32xf32, #tpu.memory_space<vmem>>, vector<8x32xf32>
    %c0_1 = arith.constant 0 : index
    %c0_2 = arith.constant 0 : index
    %1 = vector.load %arg1[%c0_1, %c0_2] : memref<8x32xf32, #tpu.memory_space<vmem>>, vector<8x32xf32>
    %c0_3 = arith.constant 0 : index
    %c0_4 = arith.constant 0 : index
    %2 = vector.load %arg2[%c0_3, %c0_4] : memref<8x32xf32, #tpu.memory_space<vmem>>, vector<8x32xf32>
    %3 = tpu.concatenate %0, %1, %2 in 0 : vector<8x32xf32>, vector<8x32xf32>, vector<8x32xf32> -> vector<24x32xf32>
    %c0_5 = arith.constant 0 : index
    %c0_6 = arith.constant 0 : index
    %4 = vector.load %arg3[%c0_5, %c0_6] : memref<32x128xf32, #tpu.memory_space<vmem>>, vector<32x128xf32>
    %cst = arith.constant dense<0.000000e+00> : vector<24x128xf32>
    %5 = tpu.matmul %3, %4, %cst {dimension_numbers = #tpu.dot_dimension_numbers<[1], [0], [0], [1], [0, 0, 1, 1], [], []>} : vector<24x32xf32>, vector<32x128xf32>, vector<24x128xf32> -> vector<24x128xf32>
    %c0_7 = arith.constant 0 : index
    %c0_8 = arith.constant 0 : index
    %6 = vector.load %arg4[%c0_7, %c0_8] : memref<1x128xf32, #tpu.memory_space<vmem>>, vector<1x128xf32>
    %7 = vector.broadcast %6 : vector<1x128xf32> to vector<24x128xf32>
    %8 = arith.addf %5, %7 : vector<24x128xf32>
    %cst_9 = arith.constant 0.000000e+00 : f32
    %9 = vector.broadcast %cst_9 : f32 to vector<24x128xf32>
    %10 = arith.maximumf %8, %9 : vector<24x128xf32>
    %c0_10 = arith.constant 0 : index
    %c0_11 = arith.constant 0 : index
    %11 = vector.load %arg5[%c0_10, %c0_11] : memref<128x128xf32, #tpu.memory_space<vmem>>, vector<128x128xf32>
    %cst_12 = arith.constant dense<0.000000e+00> : vector<24x128xf32>
    %12 = tpu.matmul %10, %11, %cst_12 {dimension_numbers = #tpu.dot_dimension_numbers<[1], [0], [0], [1], [0, 0, 1, 1], [], []>} : vector<24x128xf32>, vector<128x128xf32>, vector<24x128xf32> -> vector<24x128xf32>
    %c0_13 = arith.constant 0 : index
    %c0_14 = arith.constant 0 : index
    %13 = vector.load %arg6[%c0_13, %c0_14] : memref<1x128xf32, #tpu.memory_space<vmem>>, vector<1x128xf32>
    %14 = vector.broadcast %13 : vector<1x128xf32> to vector<24x128xf32>
    %15 = arith.addf %12, %14 : vector<24x128xf32>
    %c0_15 = arith.constant 0 : index
    %c0_16 = arith.constant 0 : index
    %16 = vector.load %arg7[%c0_15, %c0_16] : memref<24x128xf32, #tpu.memory_space<vmem>>, vector<24x128xf32>
    tpu.vector_store %arg7[%c0_15, %c0_16], %15 {strides = array<i32>} : memref<24x128xf32, #tpu.memory_space<vmem>>, vector<24x128xf32>,
    return
  }
}

</mosaic_0001>

<bundles_post_ra>
// kernel: tpu_custom_call.1
= control target key start
LH: loop header
LB: loop body
LE: loop exit
PB: predicated region body
PF: predicated region fallthrough
CT: control target
= control target key end

     0   :  { %12 = vsyncpa [#allocation3], 0  ;;  %s751_s0 = inlined_call_operand.hbm [shape: f32[8,32], index: 0, kind: input, shape index: {}]   ;;  %s752_s1 = inlined_call_operand.hbm [shape: f32[8,32], index: 1, kind: input, shape index: {}]   ;;  %s753_s2 = inlined_call_operand.hbm [shape: f32[8,32], index: 2, kind: input, shape index: {}]   ;;  %s754_s3 = inlined_call_operand.hbm [shape: f32[32,128], index: 3, kind: input, shape index: {}]   ;;  %s755_s4 = inlined_call_operand.vmem [shape: f32[1,128], index: 4, kind: input, shape index: {}]   ;;  %s756_s5 = inlined_call_operand.hbm [shape: f32[128,128], index: 5, kind: input, shape index: {}]   ;;  %s757_s6 = inlined_call_operand.vmem [shape: f32[1,128], index: 6, kind: input, shape index: {}]   ;;  %s758_s7 = inlined_call_operand.hbm [shape: f32[24,128], index: 7, kind: output, shape index: {}]  }
   0x1   :  { %13 = vsyncpa [#allocation6], 0 }
   0x2   :  { %14 = vsyncpa [#allocation9], 0 }
   0x3   :  { %15 = vsyncpa [#allocation4], 0  ;;  %s591_s24 = smov [#allocation5]   ;;  %s592_s26 = smov [#allocation8]  }
   0x4   :  { %s32_s25 = sshll.u32 %s591_s24, 4  ;;  %s51_s27 = sshll.u32 %s592_s26, 4  ;;  %s33_s25 = int_to_ptr.vmem [resolvable:$true] %s32_s25  ;;  %s642_s27 = int_to_ptr.vmem [resolvable:$true] %s51_s27 }
   0x5   :  { %s451_s30 = scalar_lea.hbm %s752_s1, 128 }
   0x6   :  { %p452_p0 = scmp.ne.s32.totalorder %s752_s1, %s451_s30  ;;  %p455_p1 = scmp.lt.u32.totalorder %s451_s30, %s752_s1 }
   0x8   :  { %p457_p2 = pnand %p455_p1, %p452_p0 }
   0xa   :  { %460 = shalt.err (!%p457_p2)
}
   0xb   :  { %s461_s12 = scalar_lea.vmem %s33_s25, 128  ;;  %p466_p4 = scmp.lt.s32.totalorder %s33_s25, %s33_s25 }
   0xc   :  { %p462_p3 = scmp.ne.s32.totalorder %s33_s25, %s461_s12  ;;  %p467_p5 = scmp.lt.s32.totalorder %s461_s12, %s461_s12 }
   0xe   :  { %p468_p6 = por %p467_p5, %p466_p4 }
  0x10   :  { %p469_p7 = pnand %p468_p6, %p462_p3 }
  0x12   :  { %472 = shalt.err (!%p469_p7)
}
  0x13   :  { %35 = dma.hbm_to_vmem [thread:$0]  %s752_s1, 128, %s33_s25, [#allocation6]  }
  0x14   :  { %s473_s17 = scalar_lea.hbm %s754_s3, 512 }
  0x15   :  { %p474_p8 = scmp.ne.s32.totalorder %s754_s3, %s473_s17  ;;  %p477_p9 = scmp.lt.u32.totalorder %s473_s17, %s754_s3 }
  0x17   :  { %p479_p10 = pnand %p477_p9, %p474_p8 }
  0x19   :  { %482 = shalt.err (!%p479_p10)
}
  0x1a   :  { %s483_s22 = scalar_lea.vmem %s642_s27, 512  ;;  %p488_p12 = scmp.lt.s32.totalorder %s642_s27, %s642_s27 }
  0x1b   :  { %p484_p11 = scmp.ne.s32.totalorder %s642_s27, %s483_s22  ;;  %p489_p13 = scmp.lt.s32.totalorder %s483_s22, %s483_s22 }
  0x1d   :  { %p490_p0 = por %p489_p13, %p488_p12 }
  0x1f   :  { %p491_p1 = pnand %p490_p0, %p484_p11 }
  0x21   :  { %494 = shalt.err (!%p491_p1)
}
  0x22   :  { %s593_s1 = smov 128   ;;  %s594_s23 = smov 8  }
  0x23   :  { %57 = dma.hbm_to_vmem [thread:$0]  %s754_s3, 512, %s642_s27, [#allocation9], %s593_s1, %s593_s1, %s594_s23  }
  0x24   :  { %s595_s26 = smov [#allocation2]   ;;  %s596_s29 = smov [#allocation7]  }
  0x25   :  { %s22_s28 = sshll.u32 %s595_s26, 4  ;;  %s42_s30 = sshll.u32 %s596_s29, 4  ;;  %s23_s28 = int_to_ptr.vmem [resolvable:$true] %s22_s28  ;;  %s43_s30 = int_to_ptr.vmem [resolvable:$true] %s42_s30 }
  0x26   :  { %s495_s10 = scalar_lea.hbm %s751_s0, 128 }
  0x27   :  { %p496_p2 = scmp.ne.s32.totalorder %s751_s0, %s495_s10  ;;  %p499_p3 = scmp.lt.u32.totalorder %s495_s10, %s751_s0 }
  0x29   :  { %p501_p4 = pnand %p499_p3, %p496_p2 }
  0x2b   :  { %504 = shalt.err (!%p501_p4)
}
  0x2c   :  { %s505_s3 = scalar_lea.vmem %s23_s28, 128  ;;  %p510_p6 = scmp.lt.s32.totalorder %s23_s28, %s23_s28 }
  0x2d   :  { %p506_p5 = scmp.ne.s32.totalorder %s23_s28, %s505_s3  ;;  %p511_p7 = scmp.lt.s32.totalorder %s505_s3, %s505_s3 }
  0x2f   :  { %p512_p8 = por %p511_p7, %p510_p6 }
  0x31   :  { %p513_p9 = pnand %p512_p8, %p506_p5 }
  0x33   :  { %516 = shalt.err (!%p513_p9)
}
  0x34   :  { %25 = dma.hbm_to_vmem [thread:$0]  %s751_s0, 128, %s23_s28, [#allocation3]  }
  0x35   :  { %s517_s18 = scalar_lea.hbm %s753_s2, 128 }
  0x36   :  { %p518_p10 = scmp.ne.s32.totalorder %s753_s2, %s517_s18  ;;  %p521_p11 = scmp.lt.u32.totalorder %s517_s18, %s753_s2 }
  0x38   :  { %p523_p12 = pnand %p521_p11, %p518_p10 }
  0x3a   :  { %526 = shalt.err (!%p523_p12)
}
  0x3b   :  { %s527_s24 = scalar_lea.vmem %s43_s30, 128  ;;  %p532_p0 = scmp.lt.s32.totalorder %s43_s30, %s43_s30 }
  0x3c   :  { %p528_p13 = scmp.ne.s32.totalorder %s43_s30, %s527_s24  ;;  %p533_p1 = scmp.lt.s32.totalorder %s527_s24, %s527_s24 }
  0x3e   :  { %p534_p2 = por %p533_p1, %p532_p0 }
  0x40   :  { %p535_p3 = pnand %p534_p2, %p528_p13 }
  0x42   :  { %538 = shalt.err (!%p535_p3)
}
  0x43   :  { %45 = dma.hbm_to_vmem [thread:$0]  %s753_s2, 128, %s43_s30, [#allocation6]  }
  0x44   :  { %s597_s26 = smov [#allocation10]   ;;  %s539_s9 = scalar_lea.hbm %s756_s5, 2048 }
  0x45   :  { %s65_s28 = sshll.u32 %s597_s26, 4  ;;  %p540_p4 = scmp.ne.s32.totalorder %s756_s5, %s539_s9  ;;  %s66_s28 = int_to_ptr.vmem [resolvable:$true] %s65_s28 }
  0x46   :  { %p543_p5 = scmp.lt.u32.totalorder %s539_s9, %s756_s5 }
  0x48   :  { %p545_p6 = pnand %p543_p5, %p540_p4 }
  0x4a   :  { %548 = shalt.err (!%p545_p6)
}
  0x4b   :  { %s549_s14 = scalar_lea.vmem %s66_s28, 2048  ;;  %p554_p8 = scmp.lt.s32.totalorder %s66_s28, %s66_s28 }
  0x4c   :  { %p550_p7 = scmp.ne.s32.totalorder %s66_s28, %s549_s14  ;;  %p555_p9 = scmp.lt.s32.totalorder %s549_s14, %s549_s14 }
  0x4e   :  { %p556_p10 = por %p555_p9, %p554_p8 }
  0x50   :  { %p557_p11 = pnand %p556_p10, %p550_p7 }
  0x52   :  { %560 = shalt.err (!%p557_p11)
}
  0x53   :  { %71 = dma.hbm_to_vmem [thread:$0]  %s756_s5, 2048, %s66_s28, [#allocation9], %s593_s1, %s593_s1, %s594_s23  }
  0x54   :  { %583 = dma.done.wait [#allocation3], 128  }
  0x55   :  { %584 = vsyncadd [#allocation3], 4294967168 }
  0x56   :  { %585 = dma.done.wait [#allocation6], 256  }
  0x57   :  { %586 = vsyncadd [#allocation6], 4294967040 }
  0x58   :  { %587 = dma.done.wait [#allocation9], 2560  }
  0x59   :  { %588 = vsyncadd [#allocation9], 4294964736  ;;  %v598_v0 = vmov 0.0|0.0   ;;  %vm599_vm0 = vmmov 0   ;;  %v600_v1 = vmov 0.0   ;;  %v92_v2 = vld [vmem:[#allocation8] sm:$0xff] }
  0x5a   :  { %410 = vmatprep.subr.bf16.mxu0 %v598_v0  ;;  %360 = vmatprep.mubr.msk.f32.mxu0 %vm599_vm0, %v600_v1  ;;  %v93_v3 = vld [vmem:[#allocation8 + $0x8] sm:$0xff]  ;;  %v94_v4 = vld [vmem:[#allocation8 + $0x10] sm:$0xff]  ;;  %v95_v6 = vld [vmem:[#allocation8 + $0x18] sm:$0xff]  ;;  %vm103_vm1 = vcmask 261120   ;;  %s601_s15 = smov [#allocation11]  }
  0x5b   :  { %416 = vmatprep.subr.bf16.mxu1 %v598_v0  ;;  %401 = vmatprep.mubr.msk.f32.mxu1 %vm599_vm0, %v600_v1  ;;  %v411_v5 = vpack.c.bf16 %v93_v3, %v92_v2  ;;  %v196_v7 = vld [vmem:[#allocation10] sm:$0xff]  ;;  %v197_v8 = vld [vmem:[#allocation10 + $0x8] sm:$0xff]  ;;  %v414_v9 = vpack.c.bf16 %v95_v6, %v94_v4  ;;  %v198_v11 = vld [vmem:[#allocation10 + $0x10] sm:$0xff]  ;;  %s307_s16 = sshll.u32 %s601_s15, 4  ;;  %s308_s16 = int_to_ptr.vmem [resolvable:$true] %s307_s16 }
  0x5c   :  { %v417_v10 = vpack.c.bf16 %v197_v8, %v196_v7  ;;  %v199_v12 = vld [vmem:[#allocation10 + $0x18] sm:$0xff]  ;;  %v200_v14 = vld [vmem:[#allocation10 + $0x20] sm:$0xff]  ;;  %v201_v15 = vld [vmem:[#allocation10 + $0x28] sm:$0xff]  ;;  %s561_s17 = scalar_lea.vmem %s308_s16, 384  ;;  %p566_p13 = scmp.lt.s32.totalorder %s308_s16, %s308_s16 }
  0x5d   :  { %412 = vmatpush3.bf16.msra.mxu0 %v411_v5  ;;  %v420_v13 = vpack.c.bf16 %v199_v12, %v198_v11  ;;  %v89_v16 = vld [vmem:[#allocation2] sm:$0xff]  ;;  %v423_v17 = vpack.c.bf16 %v201_v15, %v200_v14  ;;  %v202_v18 = vld [vmem:[#allocation10 + $0x30] sm:$0xff]  ;;  %v203_v19 = vld [vmem:[#allocation10 + $0x38] sm:$0xff]  ;;  %p562_p12 = scmp.ne.s32.totalorder %s308_s16, %s561_s17  ;;  %p567_p0 = scmp.lt.s32.totalorder %s561_s17, %s561_s17 }
  0x5e   :  { %413 = vmatprep.subr.bf16.mxu0 %v598_v0  ;;  %418 = vmatpush3.bf16.msra.mxu1 %v417_v10  ;;  %v90_v20 = vld [vmem:[#allocation5] sm:$0xff]  ;;  %v426_v21 = vpack.c.bf16 %v203_v19, %v202_v18  ;;  %v204_v22 = vld [vmem:[#allocation10 + $0x40] sm:$0xff]  ;;  %v205_v23 = vld [vmem:[#allocation10 + $0x48] sm:$0xff] }
  0x5f   :  { %419 = vmatprep.subr.bf16.mxu1 %v598_v0  ;;  %v91_v24 = vld [vmem:[#allocation7] sm:$0xff]  ;;  %v429_v25 = vpack.c.bf16 %v205_v23, %v204_v22  ;;  %v206_v26 = vld [vmem:[#allocation10 + $0x50] sm:$0xff]  ;;  %v208_v29 = vld [vmem:[#allocation10 + $0x60] sm:$0xff]  ;;  %p568_p1 = por %p567_p0, %p566_p13 }
  0x60   :  { %v207_v27 = vld [vmem:[#allocation10 + $0x58] sm:$0xff]  ;;  %v209_v30 = vld [vmem:[#allocation10 + $0x68] sm:$0xff]  ;;  %v210_v32 = vld [vmem:[#allocation10 + $0x70] sm:$0xff] }
  0x61   :  { %415 = vmatpush3.bf16.msra.mxu0 %v414_v9  ;;  %v432_v28 = vpack.c.bf16 %v207_v27, %v206_v26  ;;  %v435_v31 = vpack.c.bf16 %v209_v30, %v208_v29  ;;  %v211_v33 = vld [vmem:[#allocation10 + $0x78] sm:$0xff]  ;;  %v321_v35 = vld [vmem:[%s755_s4] ss:$0 sm:$0xff]  ;;  %p569_p2 = pnand %p568_p1, %p562_p12 }
  0x62   :  { %421 = vmatpush3.bf16.msra.mxu1 %v420_v13  ;;  %v438_v34 = vpack.c.bf16 %v211_v33, %v210_v32  ;;  %v325_v48 = vld [vmem:[%s757_s6] ss:$0 sm:$0xff] }
  0x63   :  { %422 = vmatprep.subr.bf16.mxu1 %v598_v0 }
  0x64   :  { %361 = vmatmul.mubr.msk.f32.vlgmr.msra.gmra.mrb[0].mxu0 %vm103_vm1, %v89_v16 }
  0x65   :  { %363 = vmatprep.mubr.msk.f32.mxu0 %vm599_vm0, %v600_v1 }
  0x66   :  { %424 = vmatpush3.bf16.msra.mxu1 %v423_v17 }
  0x67   :  { %425 = vmatprep.subr.bf16.mxu1 %v598_v0 }
  0x68   :  { %364 = vmatmul.mubr.msk.f32.gmra.mrb[2].mxu0 %vm103_vm1, %v90_v20 }
  0x69   :  { %366 = vmatprep.mubr.msk.f32.mxu0 %vm599_vm0, %v600_v1 }
  0x6a   :  { %427 = vmatpush3.bf16.msra.mxu1 %v426_v21 }
  0x6b   :  { %428 = vmatprep.subr.bf16.mxu1 %v598_v0 }
  0x6c   :  { %367 = vmatmul.mubr.msk.f32.gmra.mrb[4].mxu0 %vm103_vm1, %v91_v24 }
  0x6e   :  { %430 = vmatpush3.bf16.msra.mxu1 %v429_v25 }
  0x6f   :  { %431 = vmatprep.subr.bf16.mxu1 %v598_v0 }
  0x72   :  { %433 = vmatpush3.bf16.msra.mxu1 %v432_v28 }
  0x73   :  { %434 = vmatprep.subr.bf16.mxu1 %v598_v0 }
  0x76   :  { %436 = vmatpush3.bf16.msra.mxu1 %v435_v31 }
  0x77   :  { %437 = vmatprep.subr.bf16.mxu1 %v598_v0 }
  0x7a   :  { %439 = vmatpush3.bf16.msra.mxu1 %v438_v34 }
 0x137   :  { %v179_v36 = vpop.f32.mrb[0].mxu0 }
 0x138   :  { %v180_v37 = vadd.f32 %v321_v35, %v179_v36  ;;  %v362_v38 = vpop.f32.mrb[1].mxu0 }
 0x13a   :  { %v193_v39 = vmax.f32 %v180_v37, 0.0 }
 0x13b   :  { %v184_v40 = vpop.f32.mrb[2].mxu0 }
 0x13c   :  { %v185_v41 = vadd.f32 %v321_v35, %v184_v40  ;;  %v365_v42 = vpop.f32.mrb[3].mxu0  ;;  %402 = vmatmul.mubr.f32.vlgmr.msra.gmra.mrb[0].mxu1 %v193_v39 }
 0x13d   :  { %404 = vmatprep.mubr.msk.f32.mxu1 %vm599_vm0, %v600_v1 }
 0x13e   :  { %v194_v43 = vmax.f32 %v185_v41, 0.0 }
 0x13f   :  { %v189_v44 = vpop.f32.mrb[4].mxu0 }
 0x140   :  { %v190_v45 = vadd.f32 %v321_v35, %v189_v44  ;;  %v368_v46 = vpop.f32.mrb[5].mxu0  ;;  %405 = vmatmul.mubr.f32.gmra.mrb[2].mxu1 %v194_v43 }
 0x141   :  { %407 = vmatprep.mubr.msk.f32.mxu1 %vm599_vm0, %v600_v1 }
 0x142   :  { %v195_v47 = vmax.f32 %v190_v45, 0.0 }
 0x144   :  { %408 = vmatmul.mubr.f32.gmra.mrb[4].mxu1 %v195_v47 }
 0x20f   :  { %v285_v49 = vpop.f32.mrb[0].mxu1 }
 0x210   :  { %v286_v50 = vadd.f32 %v325_v48, %v285_v49  ;;  %v403_v51 = vpop.f32.mrb[1].mxu1 }
 0x212   :  { %299 = vst [vmem:[#allocation11] sm:$0xff] %v286_v50 }
 0x213   :  { %v290_v52 = vpop.f32.mrb[2].mxu1 }
 0x214   :  { %v291_v53 = vadd.f32 %v325_v48, %v290_v52  ;;  %v406_v54 = vpop.f32.mrb[3].mxu1 }
 0x216   :  { %300 = vst [vmem:[#allocation11 + $0x8] sm:$0xff] %v291_v53 }
 0x217   :  { %v295_v55 = vpop.f32.mrb[4].mxu1 }
 0x218   :  { %v296_v56 = vadd.f32 %v325_v48, %v295_v55  ;;  %v409_v57 = vpop.f32.mrb[5].mxu1 }
 0x21a   :  { %301 = vst [vmem:[#allocation11 + $0x10] sm:$0xff] %v296_v56 }
 0x21b   :  { %572 = shalt.err (!%p569_p2)
}
 0x21c   :  { %s573_s19 = scalar_lea.hbm %s758_s7, 384 }
 0x21d   :  { %p574_p3 = scmp.ne.s32.totalorder %s758_s7, %s573_s19  ;;  %p577_p4 = scmp.lt.u32.totalorder %s573_s19, %s758_s7 }
 0x21f   :  { %p579_p5 = pnand %p577_p4, %p574_p3 }
 0x221   :  { %582 = shalt.err (!%p579_p5)
}
 0x222   :  { %313 = dma.vmem_to_hbm [thread:$0]  %s308_s16, 384, %s758_s7, [#allocation4], %s593_s1, %s593_s1, %s594_s23  }
 0x223   :  { %589 = dma.done.wait [#allocation4], 384  }
 0x224   :  { %590 = vsyncadd [#allocation4], 4294966912 }
 0x225   :  { %317 = vsyncpa [#allocation3], 1 }
 0x226   :  { %318 = vsyncpa [#allocation6], 1 }
 0x227   :  { %319 = vsyncpa [#allocation9], 1 }
 0x228   :  { %320 = vsyncpa [#allocation4], 1 }

</bundles_post_ra>
